<compile_context>
chip_gen: v6e
topology: v6e:2x2x1
jax: 0.10.0
libtpu: 0.0.40
codegen_flags: <defaults>
</compile_context>

<pallas_src>
import jax
import jax.numpy as jnp
from jax.experimental import pallas as pl
from jax.experimental.pallas import tpu as pltpu


# ----------------------------------------------------------------------------
# Kernel: per-row scale of a (rows, lanes) slab.
# ----------------------------------------------------------------------------
def _implicit_m_kernel(x_ref, s_ref, o_ref):
    # x_ref: (TM, TL), s_ref: (TM, 1) -> lane-broadcast multiply on the VPU.
    # Compute in fp32 so the fp32 learned parameter is not rounded before the
    # product (matches PyTorch type promotion); casts are free here.
    x = x_ref[...].astype(jnp.float32)
    s = s_ref[...].astype(jnp.float32)
    o_ref[...] = (x * s).astype(o_ref.dtype)


# ----------------------------------------------------------------------------
# Generation-aware budgets.
# ----------------------------------------------------------------------------
def _tpu_defaults():
    """Returns (target_block_bytes for x+out per step, num TensorCores, vmem cap)."""
    try:
        kind = jax.devices()[0].device_kind.lower()
    except Exception:
        kind = ""
    if ("v7" in kind) or ("7x" in kind):
        # 64 MiB VMEM/TC, 2 TCs/chip, ~3.2 TB/s HBM: ~16 MiB per step,
        # double-buffered ~36 MiB, leaves headroom under 64 MiB.
        return (16 << 20), 2, (56 << 20)
    # v5e / v6e: 128 MiB VMEM, 1 TC: bigger blocks are free.
    return (24 << 20), 1, (100 << 20)


# ----------------------------------------------------------------------------
# Tile selection: lane-dense, sublane-packed, sized jointly against the budget.
# ----------------------------------------------------------------------------
def _choose_tiles(M, L, x_itemsize, out_itemsize, target_block_bytes, num_cores):
    bpe = x_itemsize + out_itemsize                   # x block + out block, per element
    sub = max(32 // x_itemsize, 32 // out_itemsize)   # sublane packing multiple
    budget_elems = max(128, target_block_bytes // bpe)

    rows_fit = budget_elems // max(L, 1)
    if rows_fit >= min(M, sub):
        # Keep the lane axis whole: unmasked full-row stores, fewest steps.
        TL = L
        TM = min(M, rows_fit)
        if TM < M:
            TM = max(sub, (TM // sub) * sub)
    else:
        # Even a minimal packed row-tile of full rows blows the budget:
        # split the lane axis into dense multiples of 128 instead.
        TM = min(M, sub)
        lanes = max(128, budget_elems // max(TM, 1))
        TL = min(L, (lanes // 128) * 128)

    # v7x megacore: make sure both TensorCores get at least one block when the
    # tensor is big enough for the split to matter.
    if num_cores > 1 and (M * L * bpe) >= (2 << 20):
        if pl.cdiv(M, TM) * pl.cdiv(L, TL) < num_cores:
            if M >= num_cores * sub:
                TM = max(sub, ((M // num_cores) // sub) * sub)
            elif L >= num_cores * 128:
                TL = max(128, ((L // num_cores) // 128) * 128)

    return TM, TL


# ----------------------------------------------------------------------------
# Public wrapper: NCHW in, NCHW out (same semantics as the PyTorch module).
# ----------------------------------------------------------------------------
@jax.jit
def implicit_m_forward(x_nchw, implicit):
    b, c, h, w = x_nchw.shape
    M, L = b * c, h * w
    out_dtype = jnp.promote_types(x_nchw.dtype, implicit.dtype)

    # Pure reshapes (no transpose): per-channel scale becomes a per-row scale.
    x2d = x_nchw.reshape(M, L)
    scale2d = jnp.broadcast_to(implicit.reshape(1, c), (b, c)).reshape(M, 1)

    target_block_bytes, num_cores, vmem_cap = _tpu_defaults()
    x_it = x_nchw.dtype.itemsize
    o_it = jnp.dtype(out_dtype).itemsize
    s_it = scale2d.dtype.itemsize

    TM, TL = _choose_tiles(M, L, x_it, o_it, target_block_bytes, num_cores)
    grid = (pl.cdiv(M, TM), pl.cdiv(L, TL))

    # VMEM limit derived from the actual tiles: double-buffered x + out +
    # (lane-padded) scale blocks, plus margin; capped below physical VMEM.
    x_blk = TM * TL * x_it
    o_blk = TM * TL * o_it
    s_blk = ((TM + 7) // 8) * 8 * 128 * s_it
    vmem_limit = 2 * (x_blk + o_blk + s_blk) + (4 << 20)
    vmem_limit = int(min(max(vmem_limit, 16 << 20), vmem_cap))

    cost = pl.CostEstimate(
        flops=M * L,
        transcendentals=0,
        bytes_accessed=M * L * (x_it + o_it) + M * s_it,
    )

    out2d = pl.pallas_call(
        _implicit_m_kernel,
        out_shape=jax.ShapeDtypeStruct((M, L), out_dtype),
        grid=grid,
        in_specs=[
            pl.BlockSpec((TM, TL), lambda i, j: (i, j)),
            pl.BlockSpec((TM, 1), lambda i, j: (i, 0)),
        ],
        out_specs=pl.BlockSpec((TM, TL), lambda i, j: (i, j)),
        compiler_params=pltpu.CompilerParams(
            dimension_semantics=("parallel", "parallel"),
            vmem_limit_bytes=vmem_limit,
        ),
        cost_estimate=cost,
    )(x2d, scale2d)

    return out2d.reshape(b, c, h, w)


# ----------------------------------------------------------------------------
# Demo / correctness check.
# ----------------------------------------------------------------------------
if __name__ == "__main__":
    key = jax.random.PRNGKey(0)
    kx, kp = jax.random.split(key)

    b, c, h, w = 2, 4, 16, 16
    x = jax.random.normal(kx, (b, c, h, w), jnp.float32)
    # nn.init.normal_(self.implicit, mean=1.0, std=0.02)
    implicit = 1.0 + 0.02 * jax.random.normal(kp, (1, c, 1, 1), jnp.float32)

    out = jax.block_until_ready(implicit_m_forward(x, implicit))

    assert out.shape == x.shape, out.shape
    assert bool(jnp.isfinite(out).all())

    ref = implicit * x  # exact reference (broadcast multiply)
    max_err = float(jnp.max(jnp.abs(out - ref)))
    assert max_err < 1e-6, f"mismatch vs reference: {max_err}"

    print("KERNEL_OK")
</pallas_src>

<mosaic_0001>
module attributes {stable_mosaic.version = 11 : i64} {
  func.func @_implicit_m_kernel(%arg0: i32, %arg1: i32, %arg2: memref<8x256xf32, #tpu.memory_space<vmem>>, %arg3: memref<8x1xf32, #tpu.memory_space<vmem>>, %arg4: memref<8x256xf32, #tpu.memory_space<vmem>>) attributes {dimension_semantics = [#tpu.dimension_semantics<parallel>, #tpu.dimension_semantics<parallel>], iteration_bounds = array<i64: 1, 1>, scalar_prefetch = 0 : i64, scratch_operands = 0 : i64, tpu.core_type = #tpu.core_type<tc>, window_params = [{transform_indices = @transform_0, window_bounds = array<i64: 8, 256>}, {transform_indices = @transform_1, window_bounds = array<i64: 8, 1>}, {transform_indices = @transform_2, window_bounds = array<i64: 8, 256>}]} {
    %c0 = arith.constant 0 : index
    %c0_0 = arith.constant 0 : index
    %0 = vector.load %arg2[%c0, %c0_0] : memref<8x256xf32, #tpu.memory_space<vmem>>, vector<8x256xf32>
    %c0_1 = arith.constant 0 : index
    %c0_2 = arith.constant 0 : index
    %1 = vector.load %arg3[%c0_1, %c0_2] : memref<8x1xf32, #tpu.memory_space<vmem>>, vector<8x1xf32>
    %2 = vector.broadcast %1 : vector<8x1xf32> to vector<8x256xf32>
    %3 = arith.mulf %0, %2 : vector<8x256xf32>
    %c0_3 = arith.constant 0 : index
    %c0_4 = arith.constant 0 : index
    %4 = vector.load %arg4[%c0_3, %c0_4] : memref<8x256xf32, #tpu.memory_space<vmem>>, vector<8x256xf32>
    tpu.vector_store %arg4[%c0_3, %c0_4], %3 {strides = array<i32>} : memref<8x256xf32, #tpu.memory_space<vmem>>, vector<8x256xf32>,
    return
  }
  func.func @transform_0(%arg0: i32, %arg1: i32) -> (i32, i32) {
    %c0_i32 = arith.constant 0 : i32
    return %arg0, %arg1 : i32, i32
  }
  func.func @transform_1(%arg0: i32, %arg1: i32) -> (i32, i32) {
    %c0_i32 = arith.constant 0 : i32
    %c0_i32_0 = arith.constant 0 : i32
    return %arg0, %c0_i32 : i32, i32
  }
  func.func @transform_2(%arg0: i32, %arg1: i32) -> (i32, i32) {
    %c0_i32 = arith.constant 0 : i32
    return %arg0, %arg1 : i32, i32
  }
}

</mosaic_0001>

<bundles_post_ra>
// kernel: implicit_m_forward.1
= control target key start
LH: loop header
LB: loop body
LE: loop exit
PB: predicated region body
PF: predicated region fallthrough
CT: control target
= control target key end

     0   :  { %v29_v0 = vmov 0   ;;  %s60_s1 = inlined_call_operand.vmem [shape: f32[8,1], index: 1, kind: input, shape index: {}]   ;;  %s61_s0 = inlined_call_operand.vmem [shape: f32[8,256], index: 0, kind: input, shape index: {}]   ;;  %s62_s2 = inlined_call_operand.vmem [shape: f32[8,256], index: 2, kind: output, shape index: {}]  }
   0x1   :  { %28 = vset.pattern.permute.xlu0 %v29_v0  ;;  %v13_v1 = vld [vmem:[%s60_s1] sm:$0xff]  ;;  %v12_v3 = vld [vmem:[%s61_s0 + $0x8] sm:$0xff] }
   0x2   :  { %16 = vperm.xlu0 %28, %v13_v1   ;;  %v11_v2 = vld [vmem:[%s61_s0] sm:$0xff] }
  0x7d   :  { %v17_v4 = vpop.permute.xlu0 %16 }
  0x7e   :  { %v19_v5 = vmul.f32 %v17_v4, %v11_v2  ;;  %v20_v6 = vmul.f32 %v17_v4, %v12_v3 }
  0x80   :  { %21 = vst [vmem:[%s62_s2] sm:$0xff] %v19_v5  ;;  %22 = vst [vmem:[%s62_s2 + $0x8] sm:$0xff] %v20_v6 }

</bundles_post_ra>
